<compile_context>
chip_gen: v7x
topology: tpu7x:2x2x1
jax: 0.10.0
libtpu: 0.0.40
codegen_flags: <defaults>
</compile_context>

<pallas_src>
import functools
import math

import jax
import jax.numpy as jnp
from jax.experimental import pallas as pl
from jax.experimental.pallas import tpu as pltpu


# ------------------------------ kernel bodies ------------------------------ #

def _normalize(x, eps):
    # f32 accumulation, two-pass (centered) variance -> matches PyTorch
    # F.layer_norm (biased variance, eps inside rsqrt) and avoids the
    # E[x^2]-mean^2 cancellation issue.
    x32 = x.astype(jnp.float32)
    mean = jnp.mean(x32, axis=-1, keepdims=True)
    xc = x32 - mean
    var = jnp.mean(xc * xc, axis=-1, keepdims=True)
    return xc * jax.lax.rsqrt(var + eps)           # rsqrt -> EUP slot (free)


def _ln_ens_from2d_kernel(x_ref, w_ref, b_ref, o_ref, *, eps):
    # x: (TB, D); w, b: (E, 1, D); o: (E, TB, D)
    xn = _normalize(x_ref[...], eps)               # normalize ONCE
    # per-member affine broadcast over the ensemble dim, fused FMA straight
    # into the output store (no intermediate staging of the (E, TB, D) tile).
    o_ref[...] = (xn[None, :, :] * w_ref[...] + b_ref[...]).astype(o_ref.dtype)


def _ln_ens_from3d_kernel(x_ref, w_ref, b_ref, o_ref, *, eps):
    # x: (E, TB, D); w, b: (E, 1, D); o: (E, TB, D)
    xn = _normalize(x_ref[...], eps)
    o_ref[...] = (xn * w_ref[...] + b_ref[...]).astype(o_ref.dtype)


def _ln_noaff_kernel(x_ref, o_ref, *, eps):
    # elementwise_affine=False: output tile has the same shape as the input
    # tile ((TB, D) for 2-D inputs, (E, TB, D) for 3-D inputs).
    o_ref[...] = _normalize(x_ref[...], eps).astype(o_ref.dtype)


# --------------------------------- wrapper --------------------------------- #

def layer_norm_ensemble_forward(x, weight=None, bias=None, *,
                                ensemble_size=3, eps=1e-5, block_rows=1024):
    """LayerNormEnsemble.forward.

    x: (B, D) or (E, B, D); weight/bias: (E, 1, D) or None.
    Returns an (E, B, D) output matching the PyTorch module.
    """
    if x.ndim == 2:
        B, D = x.shape
        E = ensemble_size
    elif x.ndim == 3:
        E, B, D = x.shape
        assert E == ensemble_size, (E, ensemble_size)
    else:
        raise ValueError(
            "LayerNormEnsemble layer does not support inputs with more than 3 "
            "dimensions.")

    affine = weight is not None
    out_dtype = jnp.result_type(x.dtype, weight.dtype) if affine else x.dtype

    # ----------------- small-B path: no grid, everything in VMEM ----------- #
    if B <= block_rows:
        if affine:
            kernel = functools.partial(
                _ln_ens_from2d_kernel if x.ndim == 2 else _ln_ens_from3d_kernel,
                eps=eps)
            args = (x, weight, bias)
            out_shape = jax.ShapeDtypeStruct((E, B, D), out_dtype)
        else:
            kernel = functools.partial(_ln_noaff_kernel, eps=eps)
            args = (x,)
            out_shape = jax.ShapeDtypeStruct(x.shape, out_dtype)

        vmem_spec = pl.BlockSpec(memory_space=pltpu.MemorySpace.VMEM)
        out = pl.pallas_call(
            kernel,
            out_shape=out_shape,
            in_specs=[vmem_spec] * len(args),
            out_specs=vmem_spec,
        )(*args)

        if x.ndim == 2 and not affine:
            # Kernel stored the normalized slab once; replicate outside.
            out = jnp.broadcast_to(out[None], (E, B, D))
        return out

    # --------------- production-B path: batch-tiled, pipelined ------------- #
    tb = block_rows
    assert tb % 8 == 0, "block_rows must be a multiple of 8 (f32 sublane tile)"
    grid = (pl.cdiv(B, tb),)

    if x.ndim == 2:
        x_spec = pl.BlockSpec((tb, D), lambda i: (i, 0))
        x_block = (tb, D)
    else:
        x_spec = pl.BlockSpec((E, tb, D), lambda i: (0, i, 0))
        x_block = (E, tb, D)

    if affine:
        kernel = functools.partial(
            _ln_ens_from2d_kernel if x.ndim == 2 else _ln_ens_from3d_kernel,
            eps=eps)
        wb_spec = pl.BlockSpec((E, 1, D), lambda i: (0, 0, 0))
        in_specs = [x_spec, wb_spec, wb_spec]
        args = (x, weight, bias)
        out_spec = pl.BlockSpec((E, tb, D), lambda i: (0, i, 0))
        out_shape = jax.ShapeDtypeStruct((E, B, D), out_dtype)
        block_shapes = [x_block, (E, 1, D), (E, 1, D), (E, tb, D)]
    else:
        kernel = functools.partial(_ln_noaff_kernel, eps=eps)
        in_specs = [x_spec]
        args = (x,)
        out_spec = x_spec
        out_shape = jax.ShapeDtypeStruct(x.shape, out_dtype)
        block_shapes = [x_block, x_block]

    # Explicit VMEM budget: 2 pipeline buffers per operand (+ headroom), so a
    # tile validated on v5e/v6e doesn't silently shrink or OOM on v7x (64 MiB
    # physical / 32 MiB scoped default; v5e scoped default is only 16 MiB).
    budget = 2 * sum(math.prod(s) for s in block_shapes) * 4 + (4 << 20)
    vmem_limit = min(max(budget, 16 << 20), 64 << 20)

    out = pl.pallas_call(
        kernel,
        out_shape=out_shape,
        grid=grid,
        in_specs=in_specs,
        out_specs=out_spec,
        compiler_params=pltpu.CompilerParams(
            dimension_semantics=("parallel",),   # batch axis -> both TCs on v7x
            vmem_limit_bytes=vmem_limit),
    )(*args)

    if x.ndim == 2 and not affine:
        out = jnp.broadcast_to(out[None], (E, B, D))
    return out


# ----------------------------- pure-JAX reference -------------------------- #

def reference_forward(x, weight, bias, ensemble_size, eps):
    if x.ndim == 2:
        x = jnp.broadcast_to(x[None], (ensemble_size,) + x.shape)
    mean = jnp.mean(x, axis=-1, keepdims=True)
    var = jnp.mean((x - mean) ** 2, axis=-1, keepdims=True)
    xn = (x - mean) / jnp.sqrt(var + eps)
    if weight is not None:
        xn = xn * weight + bias
    return xn


# ----------------------------------- main ---------------------------------- #

if __name__ == "__main__":
    E = 3          # ensemble_size (module default)
    B = 8          # batch
    D = 128        # normalized_shape (lane-dense last dim)
    eps = 1e-5

    key = jax.random.PRNGKey(0)
    kx2, kx3, kw, kb, kbig = jax.random.split(key, 5)

    # Module init is ones/zeros; use perturbed values (as after training) so
    # the per-member affine broadcast is actually exercised.
    weight = 1.0 + 0.1 * jax.random.normal(kw, (E, 1, D), jnp.float32)
    bias = 0.1 * jax.random.normal(kb, (E, 1, D), jnp.float32)

    # --- 2-D input, small-B (no-grid) path ---
    x2 = jax.random.normal(kx2, (B, D), jnp.float32)
    out2 = jax.block_until_ready(
        layer_norm_ensemble_forward(x2, weight, bias, ensemble_size=E, eps=eps))
    ref2 = reference_forward(x2, weight, bias, E, eps)
    assert out2.shape == (E, B, D), out2.shape
    assert out2.dtype == jnp.float32, out2.dtype
    assert jnp.allclose(out2, ref2, rtol=1e-4, atol=1e-4), \
        f"2D path max abs err {jnp.max(jnp.abs(out2 - ref2))}"

    # --- 3-D input, small-B (no-grid) path ---
    x3 = jax.random.normal(kx3, (E, B, D), jnp.float32)
    out3 = jax.block_until_ready(
        layer_norm_ensemble_forward(x3, weight, bias, ensemble_size=E, eps=eps))
    ref3 = reference_forward(x3, weight, bias, E, eps)
    assert out3.shape == (E, B, D), out3.shape
    assert jnp.allclose(out3, ref3, rtol=1e-4, atol=1e-4), \
        f"3D path max abs err {jnp.max(jnp.abs(out3 - ref3))}"

    # --- elementwise_affine=False path (kernel stores (B, D) once) ---
    outn = jax.block_until_ready(
        layer_norm_ensemble_forward(x2, None, None, ensemble_size=E, eps=eps))
    refn = reference_forward(x2, None, None, E, eps)
    assert outn.shape == (E, B, D), outn.shape
    assert jnp.allclose(outn, refn, rtol=1e-4, atol=1e-4), \
        f"no-affine path max abs err {jnp.max(jnp.abs(outn - refn))}"

    # --- batch-tiled (production) path, exercised at small scale ---
    Bt = 48
    xb = jax.random.normal(kbig, (Bt, D), jnp.float32)
    outb = jax.block_until_ready(
        layer_norm_ensemble_forward(xb, weight, bias, ensemble_size=E, eps=eps,
                                    block_rows=16))        # grid=(3,)
    refb = reference_forward(xb, weight, bias, E, eps)
    assert outb.shape == (E, Bt, D), outb.shape
    assert jnp.allclose(outb, refb, rtol=1e-4, atol=1e-4), \
        f"tiled path max abs err {jnp.max(jnp.abs(outb - refb))}"

    print("KERNEL_OK")
</pallas_src>

<mosaic_0001>
module attributes {stable_mosaic.version = 11 : i64} {
  func.func @_ln_ens_from2d_kernel(%arg0: memref<8x128xf32, #tpu.memory_space<vmem>>, %arg1: memref<3x1x128xf32, #tpu.memory_space<vmem>>, %arg2: memref<3x1x128xf32, #tpu.memory_space<vmem>>, %arg3: memref<3x8x128xf32, #tpu.memory_space<vmem>>) attributes {dimension_semantics = [], scalar_prefetch = 0 : i64, scratch_operands = 0 : i64, tpu.core_type = #tpu.core_type<tc>} {
    %c0 = arith.constant 0 : index
    %c0_0 = arith.constant 0 : index
    %0 = vector.load %arg0[%c0, %c0_0] : memref<8x128xf32, #tpu.memory_space<vmem>>, vector<8x128xf32>
    %cst = arith.constant dense<0.000000e+00> : vector<8xf32>
    %1 = vector.multi_reduction <add>, %0, %cst [1] : vector<8x128xf32> to vector<8xf32>
    %2 = vector.shape_cast %1 : vector<8xf32> to vector<8x1xf32>
    %cst_1 = arith.constant 1.280000e+02 : f32
    %3 = vector.broadcast %cst_1 : f32 to vector<8x1xf32>
    %4 = arith.divf %2, %3 : vector<8x1xf32>
    %5 = vector.broadcast %4 : vector<8x1xf32> to vector<8x128xf32>
    %6 = arith.subf %0, %5 : vector<8x128xf32>
    %7 = arith.mulf %6, %6 : vector<8x128xf32>
    %cst_2 = arith.constant dense<0.000000e+00> : vector<8xf32>
    %8 = vector.multi_reduction <add>, %7, %cst_2 [1] : vector<8x128xf32> to vector<8xf32>
    %9 = vector.shape_cast %8 : vector<8xf32> to vector<8x1xf32>
    %cst_3 = arith.constant 1.280000e+02 : f32
    %10 = vector.broadcast %cst_3 : f32 to vector<8x1xf32>
    %11 = arith.divf %9, %10 : vector<8x1xf32>
    %cst_4 = arith.constant 9.99999974E-6 : f32
    %12 = vector.broadcast %cst_4 : f32 to vector<8x1xf32>
    %13 = arith.addf %11, %12 : vector<8x1xf32>
    %14 = math.rsqrt %13 : vector<8x1xf32>
    %15 = vector.broadcast %14 : vector<8x1xf32> to vector<8x128xf32>
    %16 = arith.mulf %6, %15 : vector<8x128xf32>
    %17 = vector.shape_cast %16 : vector<8x128xf32> to vector<1x8x128xf32>
    %c0_5 = arith.constant 0 : index
    %c0_6 = arith.constant 0 : index
    %c0_7 = arith.constant 0 : index
    %18 = vector.load %arg1[%c0_5, %c0_6, %c0_7] : memref<3x1x128xf32, #tpu.memory_space<vmem>>, vector<3x1x128xf32>
    %19 = vector.broadcast %17 : vector<1x8x128xf32> to vector<3x8x128xf32>
    %20 = vector.broadcast %18 : vector<3x1x128xf32> to vector<3x8x128xf32>
    %21 = arith.mulf %19, %20 : vector<3x8x128xf32>
    %c0_8 = arith.constant 0 : index
    %c0_9 = arith.constant 0 : index
    %c0_10 = arith.constant 0 : index
    %22 = vector.load %arg2[%c0_8, %c0_9, %c0_10] : memref<3x1x128xf32, #tpu.memory_space<vmem>>, vector<3x1x128xf32>
    %23 = vector.broadcast %22 : vector<3x1x128xf32> to vector<3x8x128xf32>
    %24 = arith.addf %21, %23 : vector<3x8x128xf32>
    %c0_11 = arith.constant 0 : index
    %c0_12 = arith.constant 0 : index
    %c0_13 = arith.constant 0 : index
    %25 = vector.load %arg3[%c0_11, %c0_12, %c0_13] : memref<3x8x128xf32, #tpu.memory_space<vmem>>, vector<3x8x128xf32>
    tpu.vector_store %arg3[%c0_11, %c0_12, %c0_13], %24 {strides = array<i32>} : memref<3x8x128xf32, #tpu.memory_space<vmem>>, vector<3x8x128xf32>,
    return
  }
}

</mosaic_0001>

<bundles_post_ra>
// kernel: tpu_custom_call.1
= control target key start
LH: loop header
LB: loop body
LE: loop exit
PB: predicated region body
PF: predicated region fallthrough
CT: control target
= control target key end

     0   :  { %8 = vsyncpa [#allocation3], 0  ;;  %s234_s0 = inlined_call_operand.hbm [shape: f32[8,128], index: 0, kind: input, shape index: {}]   ;;  %s235_s1 = inlined_call_operand.vmem [shape: f32[3,1,128], index: 1, kind: input, shape index: {}]   ;;  %s236_s2 = inlined_call_operand.vmem [shape: f32[3,1,128], index: 2, kind: input, shape index: {}]   ;;  %s237_s3 = inlined_call_operand.hbm [shape: f32[3,8,128], index: 3, kind: output, shape index: {}]  }
   0x1   :  { %9 = vsyncpa [#allocation4], 0  ;;  %s168_s12 = smov [#allocation2]   ;;  %s120_s16 = scalar_lea.hbm %s234_s0, 128 }
   0x2   :  { %s16_s13 = sshll.u32 %s168_s12, 4  ;;  %p121_p0 = scmp.ne.s32.totalorder %s234_s0, %s120_s16  ;;  %s17_s13 = int_to_ptr.vmem [resolvable:$true] %s16_s13 }
   0x3   :  { %p124_p1 = scmp.lt.u32.totalorder %s120_s16, %s234_s0 }
   0x5   :  { %p126_p2 = pnand %p124_p1, %p121_p0 }
   0x7   :  { %129 = shalt.err (!%p126_p2)
}
   0x8   :  { %s130_s21 = scalar_lea.vmem %s17_s13, 128  ;;  %p135_p4 = scmp.lt.s32.totalorder %s17_s13, %s17_s13 }
   0x9   :  { %p131_p3 = scmp.ne.s32.totalorder %s17_s13, %s130_s21  ;;  %p136_p5 = scmp.lt.s32.totalorder %s130_s21, %s130_s21 }
   0xb   :  { %p137_p6 = por %p136_p5, %p135_p4 }
   0xd   :  { %p138_p7 = pnand %p137_p6, %p131_p3 }
   0xf   :  { %141 = shalt.err (!%p138_p7)
}
  0x10   :  { %19 = dma.hbm_to_vmem [thread:$0]  %s234_s0, 128, %s17_s13, [#allocation3]  }
  0x11   :  { %164 = dma.done.wait [#allocation3], 128  }
  0x12   :  { %165 = vsyncadd [#allocation3], 4294967168  ;;  %v27_v0 = vld [vmem:[#allocation2] sm:$0xff]  ;;  %s169_s29 = smov [#allocation5]  }
  0x13   :  { %28 = vadd.xlane.f32.xlu0 %v27_v0  ;;  %v108_v9 = vld [vmem:[%s235_s1] ss:$0 sm:$0xff]  ;;  %v109_v10 = vld [vmem:[%s235_s1 + $0x1] ss:$0 sm:$0xff]  ;;  %v110_v11 = vld [vmem:[%s235_s1 + $0x2] ss:$0 sm:$0xff] }
  0x14   :  { %s96_s30 = sshll.u32 %s169_s29, 4  ;;  %v111_v13 = vld [vmem:[%s236_s2] ss:$0 sm:$0xff]  ;;  %v112_v14 = vld [vmem:[%s236_s2 + $0x1] ss:$0 sm:$0xff]  ;;  %s97_s30 = int_to_ptr.vmem [resolvable:$true] %s96_s30 }
  0x15   :  { %v113_v15 = vld [vmem:[%s236_s2 + $0x2] ss:$0 sm:$0xff]  ;;  %s142_s1 = scalar_lea.vmem %s97_s30, 384  ;;  %p147_p9 = scmp.lt.s32.totalorder %s97_s30, %s97_s30 }
  0x16   :  { %p143_p8 = scmp.ne.s32.totalorder %s97_s30, %s142_s1  ;;  %p148_p10 = scmp.lt.s32.totalorder %s142_s1, %s142_s1 }
  0x18   :  { %p149_p11 = por %p148_p10, %p147_p9 }
  0x1a   :  { %p150_p12 = pnand %p149_p11, %p143_p8 }
  0xa0   :  { %v29_v1 = vpop.xlane.xlu0 %28 }
  0xa1   :  { %v31_v2 = vmul.f32 0.0078125, %v29_v1 }
  0xa3   :  { %v32_v3 = vsub.f32 %v27_v0, %v31_v2 }
  0xa5   :  { %v33_v4 = vmul.f32 %v32_v3, %v32_v3 }
  0xa7   :  { %34 = vadd.xlane.f32.xlu0 %v33_v4 }
 0x134   :  { %v35_v5 = vpop.xlane.xlu0 %34 }
 0x135   :  { %v36_v6 = vmul.f32 0.0078125, %v35_v5 }
 0x137   :  { %v37_v7 = vadd.f32 1e-05, %v36_v6 }
 0x139   :  { %118 = vrsqrt.f32 %v37_v7 }
 0x143   :  { %v119_v8 = vpop.eup %118 }
 0x144   :  { %v39_v12 = vmul.f32 %v119_v8, %v32_v3 }
 0x146   :  { %v61_v16 = vmul.f32 %v108_v9, %v39_v12  ;;  %v62_v17 = vmul.f32 %v109_v10, %v39_v12  ;;  %v63_v18 = vmul.f32 %v110_v11, %v39_v12 }
 0x148   :  { %v85_v19 = vadd.f32 %v111_v13, %v61_v16  ;;  %v86_v20 = vadd.f32 %v112_v14, %v62_v17  ;;  %v87_v21 = vadd.f32 %v113_v15, %v63_v18 }
 0x14a   :  { %88 = vst [vmem:[#allocation5] sm:$0xff] %v85_v19  ;;  %89 = vst [vmem:[#allocation5 + $0x8] sm:$0xff] %v86_v20 }
 0x14b   :  { %90 = vst [vmem:[#allocation5 + $0x10] sm:$0xff] %v87_v21 }
 0x14c   :  { %153 = shalt.err (!%p150_p12)
}
 0x14d   :  { %s154_s2 = scalar_lea.hbm %s237_s3, 384 }
 0x14e   :  { %p155_p13 = scmp.ne.s32.totalorder %s237_s3, %s154_s2  ;;  %p158_p0 = scmp.lt.u32.totalorder %s154_s2, %s237_s3 }
 0x150   :  { %p160_p1 = pnand %p158_p0, %p155_p13 }
 0x152   :  { %163 = shalt.err (!%p160_p1)
}
 0x153   :  { %s170_s16 = smov 128   ;;  %s171_s17 = smov 8  }
 0x154   :  { %102 = dma.vmem_to_hbm [thread:$0]  %s97_s30, 384, %s237_s3, [#allocation4], %s170_s16, %s170_s16, %s171_s17  }
 0x155   :  { %166 = dma.done.wait [#allocation4], 384  }
 0x156   :  { %167 = vsyncadd [#allocation4], 4294966912 }
 0x157   :  { %106 = vsyncpa [#allocation3], 1 }
 0x158   :  { %107 = vsyncpa [#allocation4], 1 }

</bundles_post_ra>
